<compile_context>
chip_gen: v7x
topology: tpu7x:2x2x1
jax: 0.10.0
libtpu: 0.0.40
codegen_flags: <defaults>
</compile_context>

<pallas_src>
import jax
import jax.numpy as jnp
from jax import lax
from jax.experimental import pallas as pl
from jax.experimental.pallas import tpu as pltpu


def _mlp_kernel(a_ref, c_ref,
                w1a_ref, w1c_ref, b1_ref,
                w2_ref, b2_ref,
                w3_ref, b3_ref,
                w4r_ref, b4_ref,
                o_ref):
    # Layer 1 (f32): two K=H dots == one K=2H dot on the concatenated input.
    h = (jnp.dot(a_ref[...], w1a_ref[...], preferred_element_type=jnp.float32)
         + jnp.dot(c_ref[...], w1c_ref[...], preferred_element_type=jnp.float32)
         + b1_ref[...])
    h = jnp.maximum(h, 0.0)

    # Layer 2: [tb,256] @ [256,128], bf16 MXU inputs, f32 accumulation.
    h = jnp.dot(h.astype(jnp.bfloat16), w2_ref[...],
                preferred_element_type=jnp.float32) + b2_ref[...]
    h = jnp.maximum(h, 0.0)

    # Layer 3: [tb,128] @ [128,128] (output lanes zero-padded 64 -> 128).
    h = jnp.dot(h.astype(jnp.bfloat16), w3_ref[...],
                preferred_element_type=jnp.float32) + b3_ref[...]
    h = jnp.maximum(h, 0.0)

    # Head (out_dim == 1), batch-in-lanes: contract w4 row [1, d3p] with
    # h [tb, d3p] over d3p -> [1, tb]; the sublane->lane layout change rides
    # the otherwise-idle transpose path and the store is a dense full-lane vst.
    row = lax.dot_general(
        w4r_ref[...], h.astype(jnp.bfloat16),
        dimension_numbers=(((1,), (1,)), ((), ())),
        preferred_element_type=jnp.float32) + b4_ref[...]
    o_ref[...] = row.astype(o_ref.dtype)


def _choose_batch_tile(B, H, requested=None):
    """Large batch tile (per-grid-step overhead dominates at small tiles),
    multiple of 8, VMEM-budget capped, preferring an even grid-step count so
    v7x's two TensorCores split the "parallel" axis evenly."""
    if requested is not None:
        return max(1, min(requested, B))
    if B <= 8:
        return B
    # Double-buffered f32 (anchor+cand) blocks cost 16*H*tb bytes; keep them
    # under ~8 MiB (intermediates add ~2 KiB/row) -> far below scoped VMEM on
    # v5e/v6e/v7x.
    vmem_cap = max(256, (8 << 20) // (16 * H))
    tb = min(4096, vmem_cap, B)
    tb = max(8, (tb // 8) * 8)
    steps = pl.cdiv(B, tb)
    if steps > 1 and steps % 2 == 1:
        tb_even = ((pl.cdiv(B, steps + 1) + 7) // 8) * 8
        tb_even = max(8, min(tb_even, tb))
        if pl.cdiv(B, tb_even) % 2 == 0:
            tb = tb_even
    return tb


def mlp_probe_forward(anchor_vec, cand_vec, params, *, batch_tile=None):
    """Pallas implementation of MLPProbe.forward.

    anchor_vec, cand_vec: [B, H] float32
    params: w1 [2H,256], b1 [256], w2 [256,128], b2 [128], w3 [128,64],
            b3 [64], w4 [64,1], b4 [1]   (weights stored as [in, out] = torch W.T)
    returns: [B] float32  (torch output.squeeze(dim=1))
    """
    B, H = anchor_vec.shape
    w1, b1 = params["w1"], params["b1"]
    w2, b2 = params["w2"], params["b2"]
    w3, b3 = params["w3"], params["b3"]
    w4, b4 = params["w4"], params["b4"]
    out_dim = w4.shape[1]
    # TODO(synk): only the default out_dim=1 head (squeeze(dim=1) -> [B]) is implemented.
    assert out_dim == 1, "Pallas MLPProbe kernel implements out_dim=1 only"

    d1, d2, d3 = w1.shape[1], w2.shape[1], w3.shape[1]
    d3p = max(128, ((d3 + 127) // 128) * 128)

    a32 = anchor_vec.astype(jnp.float32)
    c32 = cand_vec.astype(jnp.float32)

    # Layer-1 weights stay f32 (input-activation parity) and are split into
    # the anchor/cand halves: no [B, 2H] concat temp ever touches HBM.
    w1a = w1[:H, :].astype(jnp.float32)
    w1c = w1[H:, :].astype(jnp.float32)
    b1r = b1.reshape(1, d1).astype(jnp.float32)

    w2b = w2.astype(jnp.bfloat16)
    b2r = b2.reshape(1, d2).astype(jnp.float32)

    # Zero-pad layer-3 outputs / layer-4 rows to 128 lanes (exact: ReLU(0)=0,
    # padded w4 rows are zero).
    w3p = jnp.zeros((d2, d3p), jnp.bfloat16).at[:, :d3].set(w3.astype(jnp.bfloat16))
    b3r = jnp.zeros((1, d3p), jnp.float32).at[:, :d3].set(
        b3.reshape(1, d3).astype(jnp.float32))
    w4r = jnp.zeros((1, d3p), jnp.bfloat16).at[:, :d3].set(
        w4[:, 0].astype(jnp.bfloat16)[None, :])
    b4r = b4.reshape(1, 1).astype(jnp.float32)

    tb = _choose_batch_tile(B, H, batch_tile)
    grid_len = pl.cdiv(B, tb)

    full = lambda arr: pl.BlockSpec(arr.shape, lambda i: (0,) * arr.ndim)

    out = pl.pallas_call(
        _mlp_kernel,
        out_shape=jax.ShapeDtypeStruct((grid_len, tb), jnp.float32),
        grid_spec=pltpu.PrefetchScalarGridSpec(
            num_scalar_prefetch=0,
            grid=(grid_len,),
            in_specs=[
                pl.BlockSpec((tb, H), lambda i: (i, 0)),   # anchor block
                pl.BlockSpec((tb, H), lambda i: (i, 0)),   # cand block
                full(w1a), full(w1c), full(b1r),
                full(w2b), full(b2r),
                full(w3p), full(b3r),
                full(w4r), full(b4r),
            ],
            out_specs=pl.BlockSpec((1, tb), lambda i: (i, 0)),
        ),
        compiler_params=pltpu.CompilerParams(
            dimension_semantics=("parallel",)),
    )(a32, c32, w1a, w1c, b1r, w2b, b2r, w3p, b3r, w4r, b4r)

    # Batch lives in the lane dim of each (1, tb) output row.  Note: when B is
    # not a multiple of tb, the padded tail rows of the last block compute on
    # padded (undefined) input rows; rows are independent, so the valid rows
    # are unaffected and the tail is sliced off here.
    return out.reshape(-1)[:B]


def init_params(key, hidden_dim, out_dim=1):
    """Deterministic synthetic init matching nn.Linear shapes (stored as [in, out])."""
    dims = [hidden_dim * 2, 256, 128, 64, out_dim]
    params = {}
    for idx in range(4):
        fan_in, fan_out = dims[idx], dims[idx + 1]
        key, wk, bk = jax.random.split(key, 3)
        bound = 1.0 / jnp.sqrt(fan_in)
        params[f"w{idx + 1}"] = jax.random.uniform(
            wk, (fan_in, fan_out), jnp.float32, -bound, bound)
        params[f"b{idx + 1}"] = jax.random.uniform(
            bk, (fan_out,), jnp.float32, -bound, bound)
    return params


def _reference_forward(anchor_vec, cand_vec, params):
    x = jnp.concatenate([anchor_vec, cand_vec], axis=1)
    x = jnp.maximum(x @ params["w1"] + params["b1"], 0.0)
    x = jnp.maximum(x @ params["w2"] + params["b2"], 0.0)
    x = jnp.maximum(x @ params["w3"] + params["b3"], 0.0)
    x = x @ params["w4"] + params["b4"]
    return jnp.squeeze(x, axis=1)


if __name__ == "__main__":
    hidden_dim = 32
    batch = 8
    key = jax.random.PRNGKey(0)
    k_params, k_a, k_c = jax.random.split(key, 3)

    params = init_params(k_params, hidden_dim, out_dim=1)
    anchor = jax.random.normal(k_a, (batch, hidden_dim), jnp.float32)
    cand = jax.random.normal(k_c, (batch, hidden_dim), jnp.float32)

    out = jax.block_until_ready(mlp_probe_forward(anchor, cand, params))
    ref = _reference_forward(anchor, cand, params)
    assert out.shape == (batch,)
    # Layers 2-4 use bf16 MXU inputs (f32 accumulation) -> loosened tolerance.
    assert jnp.allclose(out, ref, atol=5e-2, rtol=5e-2), (out, ref)

    # Multi-step grid with a partial final block (B not a multiple of the tile).
    b2 = 40
    k_a2, k_c2 = jax.random.split(jax.random.PRNGKey(1))
    anchor2 = jax.random.normal(k_a2, (b2, hidden_dim), jnp.float32)
    cand2 = jax.random.normal(k_c2, (b2, hidden_dim), jnp.float32)
    out2 = jax.block_until_ready(
        mlp_probe_forward(anchor2, cand2, params, batch_tile=16))
    ref2 = _reference_forward(anchor2, cand2, params)
    assert out2.shape == (b2,)
    assert jnp.allclose(out2, ref2, atol=5e-2, rtol=5e-2), (out2, ref2)

    print("KERNEL_OK")
</pallas_src>

<mosaic_0001>
module attributes {stable_mosaic.version = 11 : i64} {
  func.func @_mlp_kernel(%arg0: i32, %arg1: memref<8x32xf32, #tpu.memory_space<vmem>>, %arg2: memref<8x32xf32, #tpu.memory_space<vmem>>, %arg3: memref<32x256xf32, #tpu.memory_space<vmem>>, %arg4: memref<32x256xf32, #tpu.memory_space<vmem>>, %arg5: memref<1x256xf32, #tpu.memory_space<vmem>>, %arg6: memref<256x128xbf16, #tpu.memory_space<vmem>>, %arg7: memref<1x128xf32, #tpu.memory_space<vmem>>, %arg8: memref<128x128xbf16, #tpu.memory_space<vmem>>, %arg9: memref<1x128xf32, #tpu.memory_space<vmem>>, %arg10: memref<1x128xbf16, #tpu.memory_space<vmem>>, %arg11: memref<1x1xf32, #tpu.memory_space<vmem>>, %arg12: memref<1x8xf32, #tpu.memory_space<vmem>>) attributes {dimension_semantics = [#tpu.dimension_semantics<parallel>], iteration_bounds = array<i64: 1>, scalar_prefetch = 0 : i64, scratch_operands = 0 : i64, tpu.core_type = #tpu.core_type<tc>, window_params = [{transform_indices = @transform_0, window_bounds = array<i64: 8, 32>}, {transform_indices = @transform_1, window_bounds = array<i64: 8, 32>}, {pipeline_mode = #tpu.pipeline_mode<synchronous>, transform_indices = @transform_2, window_bounds = array<i64: 32, 256>}, {pipeline_mode = #tpu.pipeline_mode<synchronous>, transform_indices = @transform_3, window_bounds = array<i64: 32, 256>}, {pipeline_mode = #tpu.pipeline_mode<synchronous>, transform_indices = @transform_4, window_bounds = array<i64: 1, 256>}, {pipeline_mode = #tpu.pipeline_mode<synchronous>, transform_indices = @transform_5, window_bounds = array<i64: 256, 128>}, {pipeline_mode = #tpu.pipeline_mode<synchronous>, transform_indices = @transform_6, window_bounds = array<i64: 1, 128>}, {pipeline_mode = #tpu.pipeline_mode<synchronous>, transform_indices = @transform_7, window_bounds = array<i64: 128, 128>}, {pipeline_mode = #tpu.pipeline_mode<synchronous>, transform_indices = @transform_8, window_bounds = array<i64: 1, 128>}, {pipeline_mode = #tpu.pipeline_mode<synchronous>, transform_indices = @transform_9, window_bounds = array<i64: 1, 128>}, {pipeline_mode = #tpu.pipeline_mode<synchronous>, transform_indices = @transform_10, window_bounds = array<i64: 1, 1>}, {transform_indices = @transform_11, window_bounds = array<i64: 1, 8>}]} {
    %c0 = arith.constant 0 : index
    %c0_0 = arith.constant 0 : index
    %0 = vector.load %arg1[%c0, %c0_0] : memref<8x32xf32, #tpu.memory_space<vmem>>, vector<8x32xf32>
    %c0_1 = arith.constant 0 : index
    %c0_2 = arith.constant 0 : index
    %1 = vector.load %arg3[%c0_1, %c0_2] : memref<32x256xf32, #tpu.memory_space<vmem>>, vector<32x256xf32>
    %cst = arith.constant dense<0.000000e+00> : vector<8x256xf32>
    %2 = tpu.matmul %0, %1, %cst {dimension_numbers = #tpu.dot_dimension_numbers<[1], [0], [0], [1], [0, 0, 1, 1], [], []>} : vector<8x32xf32>, vector<32x256xf32>, vector<8x256xf32> -> vector<8x256xf32>
    %c0_3 = arith.constant 0 : index
    %c0_4 = arith.constant 0 : index
    %3 = vector.load %arg2[%c0_3, %c0_4] : memref<8x32xf32, #tpu.memory_space<vmem>>, vector<8x32xf32>
    %c0_5 = arith.constant 0 : index
    %c0_6 = arith.constant 0 : index
    %4 = vector.load %arg4[%c0_5, %c0_6] : memref<32x256xf32, #tpu.memory_space<vmem>>, vector<32x256xf32>
    %cst_7 = arith.constant dense<0.000000e+00> : vector<8x256xf32>
    %5 = tpu.matmul %3, %4, %cst_7 {dimension_numbers = #tpu.dot_dimension_numbers<[1], [0], [0], [1], [0, 0, 1, 1], [], []>} : vector<8x32xf32>, vector<32x256xf32>, vector<8x256xf32> -> vector<8x256xf32>
    %6 = arith.addf %2, %5 : vector<8x256xf32>
    %c0_8 = arith.constant 0 : index
    %c0_9 = arith.constant 0 : index
    %7 = vector.load %arg5[%c0_8, %c0_9] : memref<1x256xf32, #tpu.memory_space<vmem>>, vector<1x256xf32>
    %8 = vector.broadcast %7 : vector<1x256xf32> to vector<8x256xf32>
    %9 = arith.addf %6, %8 : vector<8x256xf32>
    %cst_10 = arith.constant 0.000000e+00 : f32
    %10 = vector.broadcast %cst_10 : f32 to vector<8x256xf32>
    %11 = arith.maximumf %9, %10 : vector<8x256xf32>
    %12 = arith.truncf %11 : vector<8x256xf32> to vector<8x256xbf16>
    %c0_11 = arith.constant 0 : index
    %c0_12 = arith.constant 0 : index
    %13 = vector.load %arg6[%c0_11, %c0_12] : memref<256x128xbf16, #tpu.memory_space<vmem>>, vector<256x128xbf16>
    %cst_13 = arith.constant dense<0.000000e+00> : vector<8x128xf32>
    %14 = tpu.matmul %12, %13, %cst_13 {dimension_numbers = #tpu.dot_dimension_numbers<[1], [0], [0], [1], [0, 0, 1, 1], [], []>} : vector<8x256xbf16>, vector<256x128xbf16>, vector<8x128xf32> -> vector<8x128xf32>
    %c0_14 = arith.constant 0 : index
    %c0_15 = arith.constant 0 : index
    %15 = vector.load %arg7[%c0_14, %c0_15] : memref<1x128xf32, #tpu.memory_space<vmem>>, vector<1x128xf32>
    %16 = vector.broadcast %15 : vector<1x128xf32> to vector<8x128xf32>
    %17 = arith.addf %14, %16 : vector<8x128xf32>
    %cst_16 = arith.constant 0.000000e+00 : f32
    %18 = vector.broadcast %cst_16 : f32 to vector<8x128xf32>
    %19 = arith.maximumf %17, %18 : vector<8x128xf32>
    %20 = arith.truncf %19 : vector<8x128xf32> to vector<8x128xbf16>
    %c0_17 = arith.constant 0 : index
    %c0_18 = arith.constant 0 : index
    %21 = vector.load %arg8[%c0_17, %c0_18] : memref<128x128xbf16, #tpu.memory_space<vmem>>, vector<128x128xbf16>
    %cst_19 = arith.constant dense<0.000000e+00> : vector<8x128xf32>
    %22 = tpu.matmul %20, %21, %cst_19 {dimension_numbers = #tpu.dot_dimension_numbers<[1], [0], [0], [1], [0, 0, 1, 1], [], []>} : vector<8x128xbf16>, vector<128x128xbf16>, vector<8x128xf32> -> vector<8x128xf32>
    %c0_20 = arith.constant 0 : index
    %c0_21 = arith.constant 0 : index
    %23 = vector.load %arg9[%c0_20, %c0_21] : memref<1x128xf32, #tpu.memory_space<vmem>>, vector<1x128xf32>
    %24 = vector.broadcast %23 : vector<1x128xf32> to vector<8x128xf32>
    %25 = arith.addf %22, %24 : vector<8x128xf32>
    %cst_22 = arith.constant 0.000000e+00 : f32
    %26 = vector.broadcast %cst_22 : f32 to vector<8x128xf32>
    %27 = arith.maximumf %25, %26 : vector<8x128xf32>
    %c0_23 = arith.constant 0 : index
    %c0_24 = arith.constant 0 : index
    %28 = vector.load %arg10[%c0_23, %c0_24] : memref<1x128xbf16, #tpu.memory_space<vmem>>, vector<1x128xbf16>
    %29 = arith.truncf %27 : vector<8x128xf32> to vector<8x128xbf16>
    %cst_25 = arith.constant dense<0.000000e+00> : vector<1x8xf32>
    %30 = tpu.matmul %28, %29, %cst_25 {dimension_numbers = #tpu.dot_dimension_numbers<[1], [1], [0], [0], [0, 0, 1, 0], [], []>} : vector<1x128xbf16>, vector<8x128xbf16>, vector<1x8xf32> -> vector<1x8xf32>
    %c0_26 = arith.constant 0 : index
    %c0_27 = arith.constant 0 : index
    %31 = vector.load %arg11[%c0_26, %c0_27] : memref<1x1xf32, #tpu.memory_space<vmem>>, vector<1x1xf32>
    %32 = vector.broadcast %31 : vector<1x1xf32> to vector<1x8xf32>
    %33 = arith.addf %30, %32 : vector<1x8xf32>
    %c0_28 = arith.constant 0 : index
    %c0_29 = arith.constant 0 : index
    %34 = vector.load %arg12[%c0_28, %c0_29] : memref<1x8xf32, #tpu.memory_space<vmem>>, vector<1x8xf32>
    tpu.vector_store %arg12[%c0_28, %c0_29], %33 {strides = array<i32>} : memref<1x8xf32, #tpu.memory_space<vmem>>, vector<1x8xf32>,
    return
  }
  func.func @transform_0(%arg0: i32) -> (i32, i32) {
    %c0_i32 = arith.constant 0 : i32
    %c0_i32_0 = arith.constant 0 : i32
    return %arg0, %c0_i32 : i32, i32
  }
  func.func @transform_1(%arg0: i32) -> (i32, i32) {
    %c0_i32 = arith.constant 0 : i32
    %c0_i32_0 = arith.constant 0 : i32
    return %arg0, %c0_i32 : i32, i32
  }
  func.func @transform_2(%arg0: i32) -> (i32, i32) {
    %c0_i32 = arith.constant 0 : i32
    %c0_i32_0 = arith.constant 0 : i32
    %c0_i32_1 = arith.constant 0 : i32
    return %c0_i32, %c0_i32_0 : i32, i32
  }
  func.func @transform_3(%arg0: i32) -> (i32, i32) {
    %c0_i32 = arith.constant 0 : i32
    %c0_i32_0 = arith.constant 0 : i32
    %c0_i32_1 = arith.constant 0 : i32
    return %c0_i32, %c0_i32_0 : i32, i32
  }
  func.func @transform_4(%arg0: i32) -> (i32, i32) {
    %c0_i32 = arith.constant 0 : i32
    %c0_i32_0 = arith.constant 0 : i32
    %c0_i32_1 = arith.constant 0 : i32
    return %c0_i32, %c0_i32_0 : i32, i32
  }
  func.func @transform_5(%arg0: i32) -> (i32, i32) {
    %c0_i32 = arith.constant 0 : i32
    %c0_i32_0 = arith.constant 0 : i32
    %c0_i32_1 = arith.constant 0 : i32
    return %c0_i32, %c0_i32_0 : i32, i32
  }
  func.func @transform_6(%arg0: i32) -> (i32, i32) {
    %c0_i32 = arith.constant 0 : i32
    %c0_i32_0 = arith.constant 0 : i32
    %c0_i32_1 = arith.constant 0 : i32
    return %c0_i32, %c0_i32_0 : i32, i32
  }
  func.func @transform_7(%arg0: i32) -> (i32, i32) {
    %c0_i32 = arith.constant 0 : i32
    %c0_i32_0 = arith.constant 0 : i32
    %c0_i32_1 = arith.constant 0 : i32
    return %c0_i32, %c0_i32_0 : i32, i32
  }
  func.func @transform_8(%arg0: i32) -> (i32, i32) {
    %c0_i32 = arith.constant 0 : i32
    %c0_i32_0 = arith.constant 0 : i32
    %c0_i32_1 = arith.constant 0 : i32
    return %c0_i32, %c0_i32_0 : i32, i32
  }
  func.func @transform_9(%arg0: i32) -> (i32, i32) {
    %c0_i32 = arith.constant 0 : i32
    %c0_i32_0 = arith.constant 0 : i32
    %c0_i32_1 = arith.constant 0 : i32
    return %c0_i32, %c0_i32_0 : i32, i32
  }
  func.func @transform_10(%arg0: i32) -> (i32, i32) {
    %c0_i32 = arith.constant 0 : i32
    %c0_i32_0 = arith.constant 0 : i32
    %c0_i32_1 = arith.constant 0 : i32
    return %c0_i32, %c0_i32_0 : i32, i32
  }
  func.func @transform_11(%arg0: i32) -> (i32, i32) {
    %c0_i32 = arith.constant 0 : i32
    %c0_i32_0 = arith.constant 0 : i32
    return %arg0, %c0_i32 : i32, i32
  }
}

</mosaic_0001>

<bundles_post_ra>
// kernel: tpu_custom_call.1
= control target key start
LH: loop header
LB: loop body
LE: loop exit
PB: predicated region body
PF: predicated region fallthrough
CT: control target
= control target key end

     0   :  { %s1168_s0 = inlined_call_operand.hbm [shape: f32[8,32], index: 0, kind: input, shape index: {}]   ;;  %s1169_s1 = inlined_call_operand.hbm [shape: f32[8,32], index: 1, kind: input, shape index: {}]   ;;  %s1170_s2 = inlined_call_operand.hbm [shape: f32[32,256], index: 2, kind: input, shape index: {}]   ;;  %s1171_s3 = inlined_call_operand.hbm [shape: f32[32,256], index: 3, kind: input, shape index: {}]   ;;  %s1172_s4 = inlined_call_operand.vmem [shape: f32[1,256], index: 4, kind: input, shape index: {}]   ;;  %s1173_s5 = inlined_call_operand.hbm [shape: bf16[256,128], index: 5, kind: input, shape index: {}]   ;;  %s1174_s6 = inlined_call_operand.vmem [shape: f32[1,128], index: 6, kind: input, shape index: {}]   ;;  %s1175_s7 = inlined_call_operand.hbm [shape: bf16[128,128], index: 7, kind: input, shape index: {}]   ;;  %s1176_s8 = inlined_call_operand.vmem [shape: f32[1,128], index: 8, kind: input, shape index: {}]   ;;  %s1177_s9 = inlined_call_operand.vmem [shape: bf16[1,128], index: 9, kind: input, shape index: {}]   ;;  %s1178_s10 = inlined_call_operand.<no memory space> [shape: f32[1,1], index: 10, kind: input, shape index: {}]   ;;  %s1179_s11 = inlined_call_operand.hbm [shape: f32[1,8], index: 11, kind: output, shape index: {}]  }
   0x1   :  { %v16_v0 = vstv %s1178_s10 }
   0x2   :  { %17 = vst [vmem:[#allocation2] sm:$0x1] %v16_v0 }
   0x3   :  { %18 = vsyncpa [#allocation4], 0 }
   0x4   :  { %19 = vsyncpa [#allocation7], 0 }
   0x5   :  { %20 = vsyncpa [#allocation10], 0 }
   0x6   :  { %21 = vsyncpa [#allocation13], 0 }
   0x7   :  { %22 = vsyncpa [#allocation5], 0  ;;  %s974_s19 = smov [#allocation6]   ;;  %s810_s23 = scalar_lea.hbm %s1169_s1, 128 }
   0x8   :  { %s39_s20 = sshll.u32 %s974_s19, 4  ;;  %p811_p0 = scmp.ne.s32.totalorder %s1169_s1, %s810_s23  ;;  %s40_s20 = int_to_ptr.vmem [resolvable:$true] %s39_s20 }
   0x9   :  { %p814_p1 = scmp.lt.u32.totalorder %s810_s23, %s1169_s1 }
   0xb   :  { %p816_p2 = pnand %p814_p1, %p811_p0 }
   0xd   :  { %819 = shalt.err (!%p816_p2)
}
   0xe   :  { %s820_s10 = scalar_lea.vmem %s40_s20, 128  ;;  %p825_p4 = scmp.lt.s32.totalorder %s40_s20, %s40_s20 }
   0xf   :  { %p821_p3 = scmp.ne.s32.totalorder %s40_s20, %s820_s10  ;;  %p826_p5 = scmp.lt.s32.totalorder %s820_s10, %s820_s10 }
  0x11   :  { %p827_p6 = por %p826_p5, %p825_p4 }
  0x13   :  { %p828_p7 = pnand %p827_p6, %p821_p3 }
  0x15   :  { %831 = shalt.err (!%p828_p7)
}
  0x16   :  { %42 = dma.hbm_to_vmem [thread:$0]  %s1169_s1, 128, %s40_s20, [#allocation7]  }
  0x17   :  { %s975_s30 = smov [#allocation9]   ;;  %s976_s13 = smov [#allocation3]  }
  0x18   :  { %s60_s12 = sshll.u32 %s975_s30, 4  ;;  %s29_s14 = sshll.u32 %s976_s13, 4  ;;  %s61_s12 = int_to_ptr.vmem [resolvable:$true] %s60_s12  ;;  %s30_s14 = int_to_ptr.vmem [resolvable:$true] %s29_s14 }
  0x19   :  { %s832_s17 = scalar_lea.hbm %s1171_s3, 1024 }
  0x1a   :  { %p833_p8 = scmp.ne.s32.totalorder %s1171_s3, %s832_s17  ;;  %p836_p9 = scmp.lt.u32.totalorder %s832_s17, %s1171_s3 }
  0x1c   :  { %p838_p10 = pnand %p836_p9, %p833_p8 }
  0x1e   :  { %841 = shalt.err (!%p838_p10)
}
  0x1f   :  { %s842_s1 = scalar_lea.vmem %s61_s12, 1024  ;;  %p847_p12 = scmp.lt.s32.totalorder %s61_s12, %s61_s12 }
  0x20   :  { %p843_p11 = scmp.ne.s32.totalorder %s61_s12, %s842_s1  ;;  %p848_p13 = scmp.lt.s32.totalorder %s842_s1, %s842_s1 }
  0x22   :  { %p849_p0 = por %p848_p13, %p847_p12 }
  0x24   :  { %p850_p1 = pnand %p849_p0, %p843_p11 }
  0x26   :  { %853 = shalt.err (!%p850_p1)
}
  0x27   :  { %s977_s20 = smov 256   ;;  %s978_s23 = smov 16  }
  0x28   :  { %66 = dma.hbm_to_vmem [thread:$0]  %s1171_s3, 1024, %s61_s12, [#allocation10], %s977_s20, %s977_s20, %s978_s23  }
  0x29   :  { %s854_s10 = scalar_lea.hbm %s1168_s0, 128 }
  0x2a   :  { %p855_p2 = scmp.ne.s32.totalorder %s1168_s0, %s854_s10  ;;  %p858_p3 = scmp.lt.u32.totalorder %s854_s10, %s1168_s0 }
  0x2c   :  { %p860_p4 = pnand %p858_p3, %p855_p2 }
  0x2e   :  { %863 = shalt.err (!%p860_p4)
}
  0x2f   :  { %s864_s15 = scalar_lea.vmem %s30_s14, 128  ;;  %p869_p6 = scmp.lt.s32.totalorder %s30_s14, %s30_s14 }
  0x30   :  { %p865_p5 = scmp.ne.s32.totalorder %s30_s14, %s864_s15  ;;  %p870_p7 = scmp.lt.s32.totalorder %s864_s15, %s864_s15 }
  0x32   :  { %p871_p8 = por %p870_p7, %p869_p6 }
  0x34   :  { %p872_p9 = pnand %p871_p8, %p865_p5 }
  0x36   :  { %875 = shalt.err (!%p872_p9)
}
  0x37   :  { %32 = dma.hbm_to_vmem [thread:$0]  %s1168_s0, 128, %s30_s14, [#allocation4]  }
  0x38   :  { %s979_s16 = smov [#allocation8]   ;;  %s980_s18 = smov [#allocation11]  }
  0x39   :  { %s48_s17 = sshll.u32 %s979_s16, 4  ;;  %s74_s19 = sshll.u32 %s980_s18, 4  ;;  %s49_s17 = int_to_ptr.vmem [resolvable:$true] %s48_s17  ;;  %s75_s19 = int_to_ptr.vmem [resolvable:$true] %s74_s19 }
  0x3a   :  { %s876_s1 = scalar_lea.hbm %s1170_s2, 1024 }
  0x3b   :  { %p877_p10 = scmp.ne.s32.totalorder %s1170_s2, %s876_s1  ;;  %p880_p11 = scmp.lt.u32.totalorder %s876_s1, %s1170_s2 }
  0x3d   :  { %p882_p12 = pnand %p880_p11, %p877_p10 }
  0x3f   :  { %885 = shalt.err (!%p882_p12)
}
  0x40   :  { %s886_s0 = scalar_lea.vmem %s49_s17, 1024  ;;  %p891_p0 = scmp.lt.s32.totalorder %s49_s17, %s49_s17 }
  0x41   :  { %p887_p13 = scmp.ne.s32.totalorder %s49_s17, %s886_s0  ;;  %p892_p1 = scmp.lt.s32.totalorder %s886_s0, %s886_s0 }
  0x43   :  { %p893_p2 = por %p892_p1, %p891_p0 }
  0x45   :  { %p894_p3 = pnand %p893_p2, %p887_p13 }
  0x47   :  { %897 = shalt.err (!%p894_p3)
}
  0x48   :  { %54 = dma.hbm_to_vmem [thread:$0]  %s1170_s2, 1024, %s49_s17, [#allocation7], %s977_s20, %s977_s20, %s978_s23  }
  0x49   :  { %s898_s30 = scalar_lea.hbm %s1173_s5, 2048 }
  0x4a   :  { %p899_p4 = scmp.ne.s32.totalorder %s1173_s5, %s898_s30  ;;  %p902_p5 = scmp.lt.u32.totalorder %s898_s30, %s1173_s5 }
  0x4c   :  { %p904_p6 = pnand %p902_p5, %p899_p4 }
  0x4e   :  { %907 = shalt.err (!%p904_p6)
}
  0x4f   :  { %s908_s16 = scalar_lea.vmem %s75_s19, 2048  ;;  %p913_p8 = scmp.lt.s32.totalorder %s75_s19, %s75_s19 }
  0x50   :  { %p909_p7 = scmp.ne.s32.totalorder %s75_s19, %s908_s16  ;;  %p914_p9 = scmp.lt.s32.totalorder %s908_s16, %s908_s16 }
  0x52   :  { %p915_p10 = por %p914_p9, %p913_p8 }
  0x54   :  { %p916_p11 = pnand %p915_p10, %p909_p7 }
  0x56   :  { %919 = shalt.err (!%p916_p11)
}
  0x57   :  { %s981_s2 = smov 64   ;;  %s982_s20 = smov 4  }
  0x58   :  { %80 = dma.hbm_to_vmem [thread:$0]  %s1173_s5, 2048, %s75_s19, [#allocation10], %s981_s2, %s981_s2, %s982_s20  }
  0x59   :  { %s983_s18 = smov [#allocation12]   ;;  %s920_s24 = scalar_lea.hbm %s1175_s7, 1024 }
  0x5a   :  { %s88_s21 = sshll.u32 %s983_s18, 4  ;;  %p921_p12 = scmp.ne.s32.totalorder %s1175_s7, %s920_s24  ;;  %s89_s21 = int_to_ptr.vmem [resolvable:$true] %s88_s21 }
  0x5b   :  { %p924_p13 = scmp.lt.u32.totalorder %s920_s24, %s1175_s7 }
  0x5d   :  { %p926_p0 = pnand %p924_p13, %p921_p12 }
  0x5f   :  { %929 = shalt.err (!%p926_p0)
}
  0x60   :  { %s930_s14 = scalar_lea.vmem %s89_s21, 1024  ;;  %p935_p2 = scmp.lt.s32.totalorder %s89_s21, %s89_s21 }
  0x61   :  { %p931_p1 = scmp.ne.s32.totalorder %s89_s21, %s930_s14  ;;  %p936_p3 = scmp.lt.s32.totalorder %s930_s14, %s930_s14 }
  0x63   :  { %p937_p4 = por %p936_p3, %p935_p2 }
  0x65   :  { %p938_p5 = pnand %p937_p4, %p931_p1 }
  0x67   :  { %941 = shalt.err (!%p938_p5)
}
  0x68   :  { %94 = dma.hbm_to_vmem [thread:$0]  %s1175_s7, 1024, %s89_s21, [#allocation13], %s981_s2, %s981_s2, %s982_s20  }
  0x69   :  { %964 = dma.done.wait [#allocation4], 128  }
  0x6a   :  { %965 = vsyncadd [#allocation4], 4294967168 }
  0x6b   :  { %966 = dma.done.wait [#allocation7], 1152  }
  0x6c   :  { %967 = vsyncadd [#allocation7], 4294966144 }
  0x6d   :  { %968 = dma.done.wait [#allocation10], 3072  }
  0x6e   :  { %969 = vsyncadd [#allocation10], 4294964224 }
  0x6f   :  { %970 = dma.done.wait [#allocation13], 1024  }
  0x70   :  { %971 = vsyncadd [#allocation13], 4294966272  ;;  %v984_v1 = vmov 0.0   ;;  %v131_v2 = vld [vmem:[#allocation9 + $0x8] sm:$0xff]  ;;  %v133_v3 = vld [vmem:[#allocation9 + $0x18] sm:$0xff]  ;;  %vm138_vm0 = vcmask 261120   ;;  %v289_v50 = vlaneseq }
  0x71   :  { %206 = vmatprep.mubr.f32.mxu0 %v984_v1  ;;  %v130_v4 = vld [vmem:[#allocation9] sm:$0xff]  ;;  %v753_v5 = vpack.c.bf16 %v133_v3, %v131_v2  ;;  %v132_v6 = vld [vmem:[#allocation9 + $0x10] sm:$0xff]  ;;  %v135_v7 = vld [vmem:[#allocation9 + $0x28] sm:$0xff]  ;;  %vm985_vm1 = vmmov 0   ;;  %s987_s15 = smov [#allocation14]   ;;  %vm646_vm2 = vcmask 57344  }
  0x72   :  { %v137_v8 = vld [vmem:[#allocation9 + $0x38] sm:$0xff]  ;;  %v755_v9 = vpack.c.bf16 %v132_v6, %v130_v4  ;;  %v134_v11 = vld [vmem:[#allocation9 + $0x20] sm:$0xff]  ;;  %v136_v12 = vld [vmem:[#allocation9 + $0x30] sm:$0xff]  ;;  %v290_v51 = vshrl.u32 %v289_v50, 7  ;;  %s654_s3 = sshll.u32 %s987_s15, 4  ;;  %s655_s3 = int_to_ptr.vmem [resolvable:$true] %s654_s3 }
  0x73   :  { %v757_v10 = vpack.c.bf16 %v137_v8, %v135_v7  ;;  %754 = vmatprep.subr.bf16.mxu0 %v753_v5  ;;  %v122_v13 = vld [vmem:[#allocation8 + $0x8] sm:$0xff]  ;;  %v124_v14 = vld [vmem:[#allocation8 + $0x18] sm:$0xff]  ;;  %v759_v15 = vpack.c.bf16 %v136_v12, %v134_v11  ;;  %v121_v16 = vld [vmem:[#allocation8] sm:$0xff]  ;;  %s946_s12 = scalar_lea.vmem %s655_s3, 32  ;;  %p947_p7 = scmp.lt.s32.totalorder %s655_s3, %s655_s3 }
  0x74   :  { %756 = vmatpush1.bf16.msra.mxu0 %v755_v9  ;;  %v761_v17 = vpack.c.bf16 %v124_v14, %v122_v13  ;;  %v123_v18 = vld [vmem:[#allocation8 + $0x10] sm:$0xff]  ;;  %v126_v19 = vld [vmem:[#allocation8 + $0x28] sm:$0xff]  ;;  %v128_v20 = vld [vmem:[#allocation8 + $0x38] sm:$0xff]  ;;  %v291_v52 = vsub.s32 0, %v290_v51  ;;  %v295_v54 = vsub.s32 1, %v290_v51  ;;  %v986_v14 = vmov 0  }
  0x75   :  { %758 = vmatprep.subr.bf16.mxu0 %v757_v10  ;;  %v129_v21 = vld [vmem:[#allocation6] sm:$0xff]  ;;  %v786_v22 = vld [vmem:[#allocation11 + $0x40] sm:$0xff]   ;;  %v127_v24 = vld [vmem:[#allocation8 + $0x30] sm:$0xff]  ;;  %v763_v26 = vpack.c.bf16 %v123_v18, %v121_v16  ;;  %v765_v28 = vpack.c.bf16 %v128_v20, %v126_v19  ;;  %785 = vset.pattern.permute.xlu0 %v986_v14 }
  0x76   :  { %v125_v23 = vld [vmem:[#allocation8 + $0x20] sm:$0xff]  ;;  %694 = vmatprep.subr.bf16.mxu1 %v786_v22  ;;  %v788_v27 = vld [vmem:[#allocation11 + $0x48] sm:$0xff]   ;;  %v790_v30 = vld [vmem:[#allocation11 + $0x50] sm:$0xff]  }
  0x77   :  { %v787_v25 = vld [vmem:[#allocation11] sm:$0xff]   ;;  %v789_v29 = vld [vmem:[#allocation11 + $0x8] sm:$0xff]   ;;  %v767_v31 = vpack.c.bf16 %v127_v24, %v125_v23  ;;  %v791_v32 = vld [vmem:[#allocation11 + $0x10] sm:$0xff]  }
  0x78   :  { %760 = vmatpush1.bf16.msra.mxu0 %v759_v15  ;;  %695 = vmatpush3.bf16.msra.mxu1 %v787_v25  ;;  %v792_v33 = vld [vmem:[#allocation11 + $0x58] sm:$0xff]   ;;  %v120_v34 = vld [vmem:[#allocation3] sm:$0xff]  ;;  %v794_v36 = vld [vmem:[#allocation11 + $0x60] sm:$0xff]  }
  0x79   :  { %762 = vmatprep.subr.bf16.mxu0 %v761_v17  ;;  %696 = vmatprep.subr.bf16.mxu1 %v788_v27  ;;  %v793_v35 = vld [vmem:[#allocation11 + $0x18] sm:$0xff]   ;;  %v795_v37 = vld [vmem:[#allocation11 + $0x20] sm:$0xff]   ;;  %v796_v38 = vld [vmem:[#allocation11 + $0x68] sm:$0xff]  }
  0x7a   :  { %v797_v39 = vld [vmem:[#allocation11 + $0x28] sm:$0xff]   ;;  %v798_v40 = vld [vmem:[#allocation11 + $0x70] sm:$0xff]   ;;  %v800_v42 = vld [vmem:[#allocation11 + $0x78] sm:$0xff]  }
  0x7b   :  { %666 = vmatmul.mubr.msk.f32.vlgmr.msra.gmra.mrb[0].mxu0 %vm138_vm0, %v129_v21  ;;  %v799_v41 = vld [vmem:[#allocation11 + $0x30] sm:$0xff]   ;;  %v801_v43 = vld [vmem:[#allocation11 + $0x38] sm:$0xff]   ;;  %v802_v44 = vld [vmem:[#allocation12] sm:$0xff]  }
  0x7c   :  { %764 = vmatpush1.bf16.msra.mxu0 %v763_v26  ;;  %280 = vmatprep.mubr.f32.mxu0 %v984_v1  ;;  %v803_v45 = vld [vmem:[#allocation12 + $0x8] sm:$0xff]   ;;  %v804_v46 = vld [vmem:[#allocation12 + $0x10] sm:$0xff]   ;;  %v805_v47 = vld [vmem:[#allocation12 + $0x18] sm:$0xff]  }
  0x7d   :  { %766 = vmatprep.subr.bf16.mxu0 %v765_v28  ;;  %697 = vmatpush3.bf16.msra.mxu1 %v789_v29  ;;  %v806_v48 = vld [vmem:[#allocation12 + $0x20] sm:$0xff]   ;;  %v807_v49 = vld [vmem:[#allocation12 + $0x28] sm:$0xff]   ;;  %v808_v2 = vld [vmem:[#allocation12 + $0x30] sm:$0xff]  }
  0x7e   :  { %698 = vmatprep.subr.bf16.mxu1 %v790_v30  ;;  %v287_v53 = vld [vmem:[%s1172_s4] sm:$0x3]  ;;  %v809_v3 = vld [vmem:[#allocation12 + $0x38] sm:$0xff]  }
  0x7f   :  { %v292_v55 = vrot.slane %v287_v53, %v291_v52  ;;  %v296_v56 = vrot.slane %v287_v53, %v295_v54  ;;  %v668_v5 = vld [vmem:[%s1174_s6] ss:$0 sm:$0xff] }
  0x80   :  { %768 = vmatpush1.bf16.msra.mxu0 %v767_v31  ;;  %v596_v13 = vld [vmem:[#allocation2] sm:$0x1] }
  0x81   :  { %699 = vmatpush3.bf16.msra.mxu1 %v791_v32  ;;  %727 = vmatprep.subr.bf16.mxu0 %v984_v1  ;;  %v594_v22 = vld [vmem:[%s1177_s9] sm:$0x1] }
  0x82   :  { %700 = vmatprep.subr.bf16.mxu1 %v792_v33  ;;  %599 = vperm.xlu0 %785, %v596_v13  }
  0x83   :  { %667 = vmatmul.mubr.msk.f32.vlgmr.msra.gmra.mrb[0].mxu0 %vm138_vm0, %v120_v34 }
  0x84   :  { %728 = vmatpush3.bf16.msra.mxu0 %v802_v44  ;;  %743 = vmatprep.mubr.msk.bf16.mxu0 %vm985_vm1, %v984_v1 }
  0x85   :  { %701 = vmatpush3.bf16.msra.mxu1 %v793_v35  ;;  %729 = vmatprep.subr.bf16.mxu0 %v984_v1 }
  0x86   :  { %702 = vmatprep.subr.bf16.mxu1 %v794_v36 }
  0x88   :  { %730 = vmatpush3.bf16.msra.mxu0 %v803_v45 }
  0x89   :  { %703 = vmatpush3.bf16.msra.mxu1 %v795_v37  ;;  %731 = vmatprep.subr.bf16.mxu0 %v984_v1 }
  0x8a   :  { %704 = vmatprep.subr.bf16.mxu1 %v796_v38 }
  0x8c   :  { %732 = vmatpush3.bf16.msra.mxu0 %v804_v46 }
  0x8d   :  { %705 = vmatpush3.bf16.msra.mxu1 %v797_v39  ;;  %733 = vmatprep.subr.bf16.mxu0 %v984_v1 }
  0x8e   :  { %706 = vmatprep.subr.bf16.mxu1 %v798_v40 }
  0x90   :  { %734 = vmatpush3.bf16.msra.mxu0 %v805_v47 }
  0x91   :  { %707 = vmatpush3.bf16.msra.mxu1 %v799_v41  ;;  %735 = vmatprep.subr.bf16.mxu0 %v984_v1 }
  0x92   :  { %708 = vmatprep.subr.bf16.mxu1 %v800_v42 }
  0x94   :  { %736 = vmatpush3.bf16.msra.mxu0 %v806_v48 }
  0x95   :  { %709 = vmatpush3.bf16.msra.mxu1 %v801_v43  ;;  %737 = vmatprep.subr.bf16.mxu0 %v984_v1 }
  0x96   :  { %747 = vmatprep.subr.bf16.mxu1 %v984_v1 }
  0x98   :  { %738 = vmatpush3.bf16.msra.mxu0 %v807_v49 }
  0x99   :  { %739 = vmatprep.subr.bf16.mxu0 %v984_v1 }
  0x9c   :  { %740 = vmatpush3.bf16.msra.mxu0 %v808_v2 }
  0x9d   :  { %741 = vmatprep.subr.bf16.mxu0 %v984_v1 }
  0xa0   :  { %742 = vmatpush3.bf16.msra.mxu0 %v809_v3 }
 0x101   :  { %v600_v23 = vpop.permute.xlu0 %599 }
 0x102   :  { %v605_v24 = vrot.slane %v600_v23, %v291_v52 }
 0x156   :  { %v282_v57 = vpop.f32.mrb[0].mxu0 }
 0x157   :  { %v299_v58 = vadd.f32 %v292_v55, %v282_v57  ;;  %v284_v59 = vpop.f32.mrb[1].mxu0 }
 0x158   :  { %v300_v60 = vadd.f32 %v296_v56, %v284_v59 }
 0x159   :  { %v301_v61 = vmax.f32 %v299_v58, 0.0 }
 0x15a   :  { %v302_v62 = vmax.f32 %v300_v60, 0.0 }
 0x15b   :  { %v303_v0 = vpack.c.bf16 %v301_v61, %v301_v61 }
 0x15c   :  { %v304_v63 = vpack.c.bf16 %v302_v62, %v302_v62 }
 0x15e   :  { %472 = vmatprep.mubr.bf16.mxu1 %v304_v63 }
 0x15f   :  { %473 = vmatmul.mubr.bf16.vlgmr.msra.gmra.mrb[0].mxu1 %v303_v0 }
 0x160   :  { %749 = vmatprep.mubr.msk.bf16.mxu1 %vm985_vm1, %v984_v1  ;;  %v685_v1 = vld [vmem:[%s1176_s8] ss:$0 sm:$0xff]  ;;  %s942_s8 = scalar_lea.vmem %s655_s3, 16 }
 0x161   :  { %p943_p6 = scmp.ne.s32.totalorder %s655_s3, %s942_s8  ;;  %p948_p8 = scmp.lt.s32.totalorder %s946_s12, %s942_s8 }
 0x163   :  { %p949_p9 = por %p948_p8, %p947_p7 }
 0x165   :  { %p950_p10 = pnand %p949_p9, %p943_p6 }
 0x232   :  { %v710_v4 = vpop.f32.mrb[0].mxu1 }
 0x233   :  { %v711_v6 = vpop.f32.mrb[1].mxu1 }
 0x234   :  { %v712_v7 = vadd.f32 %v711_v6, %v710_v4  ;;  %v713_v8 = vpop.f32.mrb[2].mxu1 }
 0x235   :  { %v714_v9 = vpop.f32.mrb[3].mxu1 }
 0x236   :  { %v475_v10 = vadd.f32 %v712_v7, %v668_v5 }
 0x238   :  { %v480_v11 = vmax.f32 %v475_v10, 0.0 }
 0x23a   :  { %v481_v12 = vpack.c.bf16 %v480_v11, %v480_v11 }
 0x23c   :  { %744 = vmatmul.mubr.bf16.vlgmr.msra.gmra.mrb[4].mxu0 %v481_v12 }
 0x30f   :  { %v587_v15 = vpop.f32.mrb[4].mxu0 }
 0x310   :  { %v588_v16 = vadd.f32 %v685_v1, %v587_v15  ;;  %v745_v17 = vpop.f32.mrb[5].mxu0 }
 0x311   :  { %v590_v18 = vpop.f32.mrb[6].mxu0 }
 0x312   :  { %v593_v19 = vmax.f32 %v588_v16, 0.0  ;;  %v746_v20 = vpop.f32.mrb[7].mxu0 }
 0x314   :  { %v595_v21 = vpack.c.bf16 %v593_v19, %v593_v19 }
 0x316   :  { %748 = vmatpush3.bf16.xpose.msra.mxu1 %v595_v21 }
 0x31d   :  { %750 = vmatmul.mubr.bf16.vlgmr.msra.gmra.mrb[4].mxu1 %v594_v22 }
 0x3f0   :  { %v640_v25 = vpop.f32.mrb[4].mxu1 }
 0x3f1   :  { %v641_v26 = vadd.f32 %v640_v25, %v605_v24  ;;  %v751_v27 = vpop.f32.mrb[5].mxu1 }
 0x3f2   :  { %v643_v28 = vpop.f32.mrb[6].mxu1 }
 0x3f3   :  { %v752_v29 = vpop.f32.mrb[7].mxu1  ;;  %647 = vst.msk [vmem:[#allocation14] sm:$0x1] %vm646_vm2, %v641_v26 }
 0x3f4   :  { %953 = shalt.err (!%p950_p10)
}
 0x3f5   :  { %s954_s2 = scalar_lea.hbm %s1179_s11, 16 }
 0x3f6   :  { %p955_p11 = scmp.ne.s32.totalorder %s1179_s11, %s954_s2  ;;  %p958_p12 = scmp.lt.u32.totalorder %s954_s2, %s1179_s11 }
 0x3f8   :  { %p960_p13 = pnand %p958_p12, %p955_p11 }
 0x3fa   :  { %963 = shalt.err (!%p960_p13)
}
 0x3fb   :  { %657 = dma.vmem_to_hbm [thread:$0]  %s655_s3, 16, %s1179_s11, [#allocation5]  }
 0x3fc   :  { %972 = dma.done.wait [#allocation5], 16  }
 0x3fd   :  { %973 = vsyncadd [#allocation5], 4294967280 }
 0x3fe   :  { %661 = vsyncpa [#allocation4], 1 }
 0x3ff   :  { %662 = vsyncpa [#allocation7], 1 }
 0x400   :  { %663 = vsyncpa [#allocation10], 1 }
 0x401   :  { %664 = vsyncpa [#allocation13], 1 }
 0x402   :  { %665 = vsyncpa [#allocation5], 1 }

</bundles_post_ra>
